<compile_context>
chip_gen: v7x
topology: tpu7x:2x2x1
jax: 0.10.0
libtpu: 0.0.40
codegen_flags: <defaults>
</compile_context>

<pallas_src>
import functools

import jax
import jax.numpy as jnp
import numpy as np
from jax.experimental import pallas as pl
from jax.experimental.pallas import tpu as pltpu

EPS = 1e-12


def _similarity_kernel(x_ref, kn_ref, sim_ref, xn_ref, acc_ref):
    # x_ref:   (tB, tN, D) streamed x_embed tile
    # kn_ref:  (P_pad, D)  pre-normalized prompt keys (resident, fetched once)
    # sim_ref: (tB, P_pad) lane-dense similarity output
    # xn_ref:  (tB, D)     normalized x_embed mean
    # acc_ref: (tB, D) f32 running sequence-sum accumulator (scratch)
    n = pl.program_id(1)

    @pl.when(n == 0)
    def _():
        acc_ref[...] = jnp.zeros_like(acc_ref)

    # Accumulate the sequence sum.  The 1/N of the mean is dropped on purpose:
    # L2 normalization is scale-invariant, so x_norm is unchanged (up to rounding).
    acc_ref[...] += jnp.sum(x_ref[...].astype(jnp.float32), axis=1)

    @pl.when(n == pl.num_programs(1) - 1)
    def _():
        x_sum = acc_ref[...]
        x_norm = x_sum * jax.lax.rsqrt(
            jnp.maximum(jnp.sum(x_sum * x_sum, axis=-1, keepdims=True), EPS))
        xn_ref[...] = x_norm
        # Contract on the last dims of both operands (bd,pd->bp): no transpose /
        # XLU copy of the key tile, MXU consumes it natively.
        sim_ref[...] = jax.lax.dot_general(
            x_norm,
            kn_ref[...].astype(jnp.float32),
            dimension_numbers=(((1,), (1,)), ((), ())),
            preferred_element_type=jnp.float32,
        )


def _pick_tiles(B, N, D, itemsize, vmem_budget_bytes=4 * 1024 * 1024):
    """Pick (tB, tN) so that 2x double-buffered x blocks stay well inside the
    default scoped-VMEM limit on all generations (incl. v7x's 64 MiB physical)."""
    # batch tile: largest divisor of B that is <= 8
    tB = 1
    for c in range(1, min(B, 8) + 1):
        if B % c == 0:
            tB = c
    # sequence tile: largest multiple-of-8 divisor of N fitting the budget,
    # falling back to the full sequence extent (block == full dim is legal).
    max_tn = max(8, vmem_budget_bytes // max(1, tB * D * itemsize))
    tN = None
    c = 8
    while c <= min(N, max_tn):
        if N % c == 0:
            tN = c
        c += 8
    if tN is None:
        tN = N
    return tB, tN


def compute_similarity(x_embed, key_norm_padded):
    """Returns (similarity_padded (B, P_pad) f32, x_embed_norm (B, D) f32)."""
    B, N, D = x_embed.shape
    P_pad = key_norm_padded.shape[0]
    tB, tN = _pick_tiles(B, N, D, x_embed.dtype.itemsize)
    grid = (B // tB, N // tN)

    return pl.pallas_call(
        _similarity_kernel,
        out_shape=(
            jax.ShapeDtypeStruct((B, P_pad), jnp.float32),  # similarity (lane-dense)
            jax.ShapeDtypeStruct((B, D), jnp.float32),      # x_embed_norm
        ),
        grid_spec=pltpu.PrefetchScalarGridSpec(
            num_scalar_prefetch=0,
            grid=grid,
            in_specs=[
                pl.BlockSpec((tB, tN, D), lambda b, n: (b, n, 0)),
                pl.BlockSpec((P_pad, D), lambda b, n: (0, 0)),   # resident key block
            ],
            out_specs=(
                pl.BlockSpec((tB, P_pad), lambda b, n: (b, 0)),
                pl.BlockSpec((tB, D), lambda b, n: (b, 0)),
            ),
            scratch_shapes=[pltpu.VMEM((tB, D), jnp.float32)],
        ),
        compiler_params=pltpu.CompilerParams(
            dimension_semantics=("parallel", "arbitrary")),
    )(x_embed, key_norm_padded)


@functools.partial(jax.jit, static_argnames=("top_k",))
def eprompt_forward(x_embed, prompt, prompt_key, *, top_k):
    """EPrompt.forward for the prompt_pool path (prompt_mask=None)."""
    out = {}
    B, N, D = x_embed.shape
    P = prompt_key.shape[0]
    L = prompt.shape[0]
    length = prompt.shape[2]

    # One-shot tiny L2 normalization of the prompt keys, hoisted off the
    # streaming loop; pad the pool dim to a lane-dense multiple of 128.
    pk = prompt_key.astype(jnp.float32)
    prompt_key_norm = pk * jax.lax.rsqrt(
        jnp.maximum(jnp.sum(pk * pk, axis=-1, keepdims=True), EPS))
    P_pad = ((P + 127) // 128) * 128
    key_norm_padded = jnp.pad(prompt_key_norm, ((0, P_pad - P), (0, 0)))

    sim_padded, x_embed_norm = compute_similarity(x_embed, key_norm_padded)
    similarity = sim_padded[:, :P]
    out["similarity"] = similarity

    # top-k over the pool dimension (dim=1), per batch element.
    # TODO(synk): batchwise_prompt (torch.unique + counts) and prompt_mask
    # paths not implemented (config off).
    sim_top_k, idx = jax.lax.top_k(similarity, top_k)            # (B, K)
    out["prompt_idx"] = idx

    # batched_prompt_raw = prompt[:, idx]  -> (L, B, K, length, D)
    # TODO(synk): could be a scalar-prefetch Pallas DMA gather writing the
    # (L, B, K*length, D) layout directly; kept as XLA gather for now.
    batched_prompt_raw = jnp.take(prompt, idx, axis=1)
    batched_prompt = batched_prompt_raw.reshape(L, B, top_k * length, D)
    out["batched_prompt"] = batched_prompt

    batched_key_norm = jnp.take(prompt_key_norm, idx, axis=0)    # (B, K, D)
    out["selected_key"] = batched_key_norm
    out["prompt_key_norm"] = prompt_key_norm
    out["x_embed_norm"] = x_embed_norm

    # reduce_sim = sum(selected_key_norm . x_norm) / B == sum(top-k sims) / B
    out["e_reduce_sim"] = jnp.sum(sim_top_k) / B
    return out


def _reference(x_embed, prompt, prompt_key, top_k):
    # Plain-JAX reference replicating the PyTorch forward semantics.
    x_mean = jnp.mean(x_embed, axis=1)
    kn = prompt_key * jax.lax.rsqrt(
        jnp.maximum(jnp.sum(prompt_key**2, -1, keepdims=True), EPS))
    xn = x_mean * jax.lax.rsqrt(
        jnp.maximum(jnp.sum(x_mean**2, -1, keepdims=True), EPS))
    sim = (kn @ xn.T).T
    _, idx = jax.lax.top_k(sim, top_k)
    bpr = jnp.take(prompt, idx, axis=1)
    L, B, K, length, D = bpr.shape
    bp = bpr.reshape(L, B, K * length, D)
    bkn = jnp.take(kn, idx, axis=0)
    reduce_sim = jnp.sum(bkn * xn[:, None, :]) / x_embed.shape[0]
    return sim, idx, bp, reduce_sim


if __name__ == "__main__":
    # Small config: num_layers=1, pool_size=8, length=5, embed_dim=32,
    # top_k=2, batch=2, seq=8.
    L, P, LEN, D = 1, 8, 5, 32
    B, N = 2, 8
    TOP_K = 2

    key = jax.random.PRNGKey(0)
    k_prompt, k_key, k_x = jax.random.split(key, 3)

    # uniform(-1, 1) init for prompt pool and prompt_key (as in __init__)
    prompt = jax.random.uniform(k_prompt, (L, P, LEN, D), jnp.float32, -1.0, 1.0)
    prompt_key = jax.random.uniform(k_key, (P, D), jnp.float32, -1.0, 1.0)
    x_embed = jax.random.normal(k_x, (B, N, D), jnp.float32)

    out = eprompt_forward(x_embed, prompt, prompt_key, top_k=TOP_K)
    jax.block_until_ready(out)

    # sanity-check against plain-JAX reference
    sim_r, idx_r, bp_r, rs_r = _reference(x_embed, prompt, prompt_key, TOP_K)
    assert np.allclose(np.asarray(out["similarity"]), np.asarray(sim_r), atol=1e-5)
    assert np.array_equal(np.asarray(out["prompt_idx"]), np.asarray(idx_r))
    assert out["batched_prompt"].shape == (L, B, TOP_K * LEN, D)
    assert np.allclose(np.asarray(out["batched_prompt"]), np.asarray(bp_r), atol=1e-6)
    assert np.allclose(float(out["e_reduce_sim"]), float(rs_r), atol=1e-5)

    print("KERNEL_OK")
</pallas_src>

<mosaic_0001>
module attributes {stable_mosaic.version = 11 : i64} {
  func.func @_similarity_kernel(%arg0: i32, %arg1: i32, %arg2: memref<2x8x32xf32, #tpu.memory_space<vmem>>, %arg3: memref<128x32xf32, #tpu.memory_space<vmem>>, %arg4: memref<2x128xf32, #tpu.memory_space<vmem>>, %arg5: memref<2x32xf32, #tpu.memory_space<vmem>>, %arg6: memref<2x32xf32, #tpu.memory_space<vmem>>) attributes {dimension_semantics = [#tpu.dimension_semantics<parallel>, #tpu.dimension_semantics<arbitrary>], iteration_bounds = array<i64: 1, 1>, scalar_prefetch = 0 : i64, scratch_operands = 1 : i64, tpu.core_type = #tpu.core_type<tc>, window_params = [{transform_indices = @transform_0, window_bounds = array<i64: 2, 8, 32>}, {pipeline_mode = #tpu.pipeline_mode<synchronous>, transform_indices = @transform_1, window_bounds = array<i64: 128, 32>}, {transform_indices = @transform_2, window_bounds = array<i64: 2, 128>}, {transform_indices = @transform_3, window_bounds = array<i64: 2, 32>}]} {
    %c0_i32 = arith.constant 0 : i32
    %0 = arith.cmpi eq, %arg1, %c0_i32 : i32
    %1 = arith.extui %0 : i1 to i32
    %c0_i32_0 = arith.constant 0 : i32
    %2 = arith.cmpi ne, %1, %c0_i32_0 : i32
    scf.if %2 {
      %cst_9 = arith.constant 0.000000e+00 : f32
      %11 = vector.broadcast %cst_9 : f32 to vector<2x32xf32>
      %c0_10 = arith.constant 0 : index
      %c0_11 = arith.constant 0 : index
      %12 = vector.load %arg6[%c0_10, %c0_11] : memref<2x32xf32, #tpu.memory_space<vmem>>, vector<2x32xf32>
      tpu.vector_store %arg6[%c0_10, %c0_11], %11 {strides = array<i32>} : memref<2x32xf32, #tpu.memory_space<vmem>>, vector<2x32xf32>,
    } else {
    }
    %c0 = arith.constant 0 : index
    %c0_1 = arith.constant 0 : index
    %3 = vector.load %arg6[%c0, %c0_1] : memref<2x32xf32, #tpu.memory_space<vmem>>, vector<2x32xf32>
    %c0_2 = arith.constant 0 : index
    %c0_3 = arith.constant 0 : index
    %c0_4 = arith.constant 0 : index
    %4 = vector.load %arg2[%c0_2, %c0_3, %c0_4] : memref<2x8x32xf32, #tpu.memory_space<vmem>>, vector<2x8x32xf32>
    %cst = arith.constant dense<0.000000e+00> : vector<2x32xf32>
    %5 = vector.multi_reduction <add>, %4, %cst [1] : vector<2x8x32xf32> to vector<2x32xf32>
    %6 = arith.addf %3, %5 : vector<2x32xf32>
    %c0_5 = arith.constant 0 : index
    %c0_6 = arith.constant 0 : index
    %7 = vector.load %arg6[%c0_5, %c0_6] : memref<2x32xf32, #tpu.memory_space<vmem>>, vector<2x32xf32>
    tpu.vector_store %arg6[%c0_5, %c0_6], %6 {strides = array<i32>} : memref<2x32xf32, #tpu.memory_space<vmem>>, vector<2x32xf32>,
    %c0_i32_7 = arith.constant 0 : i32
    %8 = arith.cmpi eq, %arg1, %c0_i32_7 : i32
    %9 = arith.extui %8 : i1 to i32
    %c0_i32_8 = arith.constant 0 : i32
    %10 = arith.cmpi ne, %9, %c0_i32_8 : i32
    scf.if %10 {
      %c0_9 = arith.constant 0 : index
      %c0_10 = arith.constant 0 : index
      %11 = vector.load %arg6[%c0_9, %c0_10] : memref<2x32xf32, #tpu.memory_space<vmem>>, vector<2x32xf32>
      %12 = arith.mulf %11, %11 : vector<2x32xf32>
      %cst_11 = arith.constant dense<0.000000e+00> : vector<2xf32>
      %13 = vector.multi_reduction <add>, %12, %cst_11 [1] : vector<2x32xf32> to vector<2xf32>
      %14 = vector.shape_cast %13 : vector<2xf32> to vector<2x1xf32>
      %cst_12 = arith.constant 9.99999996E-13 : f32
      %15 = vector.broadcast %cst_12 : f32 to vector<2x1xf32>
      %16 = arith.maximumf %14, %15 : vector<2x1xf32>
      %17 = math.rsqrt %16 : vector<2x1xf32>
      %18 = vector.broadcast %17 : vector<2x1xf32> to vector<2x32xf32>
      %19 = arith.mulf %11, %18 : vector<2x32xf32>
      %c0_13 = arith.constant 0 : index
      %c0_14 = arith.constant 0 : index
      %20 = vector.load %arg5[%c0_13, %c0_14] : memref<2x32xf32, #tpu.memory_space<vmem>>, vector<2x32xf32>
      tpu.vector_store %arg5[%c0_13, %c0_14], %19 {strides = array<i32>} : memref<2x32xf32, #tpu.memory_space<vmem>>, vector<2x32xf32>,
      %c0_15 = arith.constant 0 : index
      %c0_16 = arith.constant 0 : index
      %21 = vector.load %arg3[%c0_15, %c0_16] : memref<128x32xf32, #tpu.memory_space<vmem>>, vector<128x32xf32>
      %cst_17 = arith.constant dense<0.000000e+00> : vector<2x128xf32>
      %22 = tpu.matmul %19, %21, %cst_17 {dimension_numbers = #tpu.dot_dimension_numbers<[1], [1], [0], [0], [0, 0, 1, 0], [], []>} : vector<2x32xf32>, vector<128x32xf32>, vector<2x128xf32> -> vector<2x128xf32>
      %c0_18 = arith.constant 0 : index
      %c0_19 = arith.constant 0 : index
      %23 = vector.load %arg4[%c0_18, %c0_19] : memref<2x128xf32, #tpu.memory_space<vmem>>, vector<2x128xf32>
      tpu.vector_store %arg4[%c0_18, %c0_19], %22 {strides = array<i32>} : memref<2x128xf32, #tpu.memory_space<vmem>>, vector<2x128xf32>,
    } else {
    }
    return
  }
  func.func @transform_0(%arg0: i32, %arg1: i32) -> (i32, i32, i32) {
    %c0_i32 = arith.constant 0 : i32
    %c0_i32_0 = arith.constant 0 : i32
    return %arg0, %arg1, %c0_i32 : i32, i32, i32
  }
  func.func @transform_1(%arg0: i32, %arg1: i32) -> (i32, i32) {
    %c0_i32 = arith.constant 0 : i32
    %c0_i32_0 = arith.constant 0 : i32
    %c0_i32_1 = arith.constant 0 : i32
    return %c0_i32, %c0_i32_0 : i32, i32
  }
  func.func @transform_2(%arg0: i32, %arg1: i32) -> (i32, i32) {
    %c0_i32 = arith.constant 0 : i32
    %c0_i32_0 = arith.constant 0 : i32
    return %arg0, %c0_i32 : i32, i32
  }
  func.func @transform_3(%arg0: i32, %arg1: i32) -> (i32, i32) {
    %c0_i32 = arith.constant 0 : i32
    %c0_i32_0 = arith.constant 0 : i32
    return %arg0, %c0_i32 : i32, i32
  }
}

</mosaic_0001>

<bundles_post_ra>
// kernel: eprompt_forward.1
= control target key start
LH: loop header
LB: loop body
LE: loop exit
PB: predicated region body
PF: predicated region fallthrough
CT: control target
= control target key end

     0   :  { %vm18_vm0 = vcmask 254976   ;;  %vm23_vm1 = vcmask 261120   ;;  %v345_v2 = vmov 0.0   ;;  %v346_v10 = vmov 0.0|0.0   ;;  %s467_s0 = inlined_call_operand.vmem [shape: f32[2,8,32], index: 0, kind: input, shape index: {}]   ;;  %s468_s1 = inlined_call_operand.vmem [shape: f32[128,32], index: 1, kind: input, shape index: {}]   ;;  %s469_s2 = inlined_call_operand.vmem [shape: f32[2,128], index: 2, kind: output, shape index: {0}]   ;;  %s470_s3 = inlined_call_operand.hbm [shape: f32[2,32], index: 3, kind: output, shape index: {1}]  }
   0x1   :  { %v21_v0 = vld [vmem:[%s467_s0] sm:$0xff]  ;;  %v22_v1 = vld [vmem:[%s467_s0 + $0x8] sm:$0xff]  ;;  %19 = vst.msk [vmem:[#allocation2] sm:$0x3] %vm18_vm0, %v345_v2  ;;  %vm386_vm2 = vmpackc.low %vm23_vm1, %vm23_vm1  ;;  %283 = vmatprep.subr.bf16.mxu0 %v346_v10 }
   0x2   :  { %v24_v3 = vsel %vm23_vm1, %v21_v0, 0.0  ;;  %v31_v4 = vsel %vm23_vm1, %v22_v1, 0.0  ;;  %v58_v5 = vld [vmem:[%s468_s1] sm:$0xff]  ;;  %v59_v6 = vld [vmem:[%s468_s1 + $0x8] sm:$0xff]  ;;  %v60_v14 = vld [vmem:[%s468_s1 + $0x10] sm:$0xff] }
   0x3   :  { %v25_v8 = vrot.slane %v24_v3, 4  ;;  %v32_v9 = vrot.slane %v31_v4, 4  ;;  %v284_v11 = vpack.c.bf16 %v59_v6, %v58_v5  ;;  %v61_v15 = vld [vmem:[%s468_s1 + $0x18] sm:$0xff] }
   0x5   :  { %v26_v12 = vadd.f32 %v25_v8, %v24_v3  ;;  %v33_v13 = vadd.f32 %v32_v9, %v31_v4  ;;  %286 = vmatpush3.bf16.xpose.msk.msra.mxu0 %vm386_vm2, %v284_v11 }
   0x6   :  { %287 = vmatprep.subr.bf16.mxu0 %v346_v10 }
   0x7   :  { %9 = vsyncpa [#allocation4], 0  ;;  %v27_v16 = vrot.slane %v26_v12, 2  ;;  %v34_v17 = vrot.slane %v33_v13, 2  ;;  %v288_v20 = vpack.c.bf16 %v61_v15, %v60_v14  ;;  %vm40_vm3 = vcmask 1041409   ;;  %v62_v26 = vld [vmem:[%s468_s1 + $0x20] sm:$0xff] }
   0x8   :  { %v20_v23 = vld [vmem:[#allocation2] sm:$0x3]  ;;  %v63_v27 = vld [vmem:[%s468_s1 + $0x28] sm:$0xff]  ;;  %v64_v31 = vld [vmem:[%s468_s1 + $0x30] sm:$0xff]  ;;  %vm347_vm4 = vmmov 0   ;;  %s348_s0 = smov [#allocation3]  }
   0x9   :  { %v28_v18 = vadd.f32 %v27_v16, %v26_v12  ;;  %v35_v19 = vadd.f32 %v34_v17, %v33_v13  ;;  %v292_v30 = vpack.c.bf16 %v63_v27, %v62_v26  ;;  %v65_v32 = vld [vmem:[%s468_s1 + $0x38] sm:$0xff]  ;;  %v66_v37 = vld [vmem:[%s468_s1 + $0x40] sm:$0xff]  ;;  %v67_v38 = vld [vmem:[%s468_s1 + $0x48] sm:$0xff]  ;;  %280 = vmatprep.mubr.msk.f32.mxu0 %vm347_vm4, %v345_v2  ;;  %s204_s20 = sshll.u32 %s348_s0, 4  ;;  %s205_s20 = int_to_ptr.vmem [resolvable:$true] %s204_s20 }
   0xa   :  { %v296_v34 = vpack.c.bf16 %v65_v32, %v64_v31  ;;  %v300_v39 = vpack.c.bf16 %v67_v38, %v66_v37  ;;  %v68_v40 = vld [vmem:[%s468_s1 + $0x50] sm:$0xff]  ;;  %v69_v41 = vld [vmem:[%s468_s1 + $0x58] sm:$0xff]  ;;  %v70_v43 = vld [vmem:[%s468_s1 + $0x60] sm:$0xff]  ;;  %s321_s21 = scalar_lea.vmem %s205_s20, 32  ;;  %p326_p1 = scmp.lt.s32.totalorder %s205_s20, %s205_s20 }
   0xb   :  { %v29_v21 = vrot.slane %v28_v18, 1  ;;  %v36_v22 = vrot.slane %v35_v19, 1  ;;  %v304_v42 = vpack.c.bf16 %v69_v41, %v68_v40  ;;  %v71_v44 = vld [vmem:[%s468_s1 + $0x68] sm:$0xff]  ;;  %v72_v46 = vld [vmem:[%s468_s1 + $0x70] sm:$0xff]  ;;  %v73_v47 = vld [vmem:[%s468_s1 + $0x78] sm:$0xff]  ;;  %p322_p0 = scmp.ne.s32.totalorder %s205_s20, %s321_s21  ;;  %p327_p2 = scmp.lt.s32.totalorder %s321_s21, %s321_s21 }
   0xc   :  { %v308_v45 = vpack.c.bf16 %v71_v44, %v70_v43  ;;  %v312_v48 = vpack.c.bf16 %v73_v47, %v72_v46 }
   0xd   :  { %v30_v24 = vadd.f32 %v29_v21, %v28_v18  ;;  %v37_v25 = vadd.f32 %v36_v22, %v35_v19  ;;  %290 = vmatpush3.bf16.xpose.msk.msra.mxu0 %vm386_vm2, %v288_v20  ;;  %p328_p3 = por %p327_p2, %p326_p1 }
   0xe   :  { %291 = vmatprep.subr.bf16.mxu0 %v346_v10 }
   0xf   :  { %v41_v28 = vsel %vm40_vm3, %v37_v25, %v30_v24  ;;  %p329_p4 = pnand %p328_p3, %p322_p0 }
  0x10   :  { %v43_v29 = vadd.f32 %v41_v28, %v20_v23 }
  0x12   :  { %45 = vst.msk [vmem:[#allocation2] sm:$0x3] %vm18_vm0, %v43_v29 }
  0x15   :  { %294 = vmatpush3.bf16.xpose.msk.msra.mxu0 %vm386_vm2, %v292_v30 }
  0x16   :  { %295 = vmatprep.subr.bf16.mxu0 %v346_v10 }
  0x19   :  { %v49_v33 = vld [vmem:[#allocation2] sm:$0x3] }
  0x1a   :  { %v50_v35 = vmul.f32 %v49_v33, %v49_v33 }
  0x1c   :  { %v51_v36 = vsel %vm18_vm0, %v50_v35, 0.0 }
  0x1d   :  { %52 = vadd.xlane.f32.xlu0 %v51_v36  ;;  %298 = vmatpush3.bf16.xpose.msk.msra.mxu0 %vm386_vm2, %v296_v34 }
  0x1e   :  { %299 = vmatprep.subr.bf16.mxu0 %v346_v10 }
  0x25   :  { %302 = vmatpush3.bf16.xpose.msk.msra.mxu0 %vm386_vm2, %v300_v39 }
  0x26   :  { %303 = vmatprep.subr.bf16.mxu0 %v346_v10 }
  0x2d   :  { %306 = vmatpush3.bf16.xpose.msk.msra.mxu0 %vm386_vm2, %v304_v42 }
  0x2e   :  { %307 = vmatprep.subr.bf16.mxu0 %v346_v10 }
  0x35   :  { %310 = vmatpush3.bf16.xpose.msk.msra.mxu0 %vm386_vm2, %v308_v45 }
  0x36   :  { %311 = vmatprep.subr.bf16.mxu0 %v346_v10 }
  0x3d   :  { %314 = vmatpush3.bf16.xpose.msk.msra.mxu0 %vm386_vm2, %v312_v48 }
  0xaa   :  { %v53_v49 = vpop.xlane.xlu0 %52 }
  0xab   :  { %v54_v50 = vmax.f32 %v53_v49, 1e-12 }
  0xad   :  { %319 = vrsqrt.f32 %v54_v50 }
  0xb7   :  { %v320_v51 = vpop.eup %319 }
  0xb8   :  { %v56_v52 = vmul.f32 %v320_v51, %v49_v33 }
  0xba   :  { %281 = vmatmul.mubr.msk.f32.vlgmr.msra.gmra.mrb[0].mxu0 %vm23_vm1, %v56_v52  ;;  %57 = vst.msk [vmem:[#allocation3] sm:$0x3] %vm18_vm0, %v56_v52 }
  0xbb   :  { %332 = shalt.err (!%p329_p4)
}
  0xbc   :  { %s333_s23 = scalar_lea.hbm %s470_s3, 32 }
  0xbd   :  { %p334_p5 = scmp.ne.s32.totalorder %s470_s3, %s333_s23  ;;  %p337_p6 = scmp.lt.u32.totalorder %s333_s23, %s470_s3 }
  0xbf   :  { %p339_p7 = pnand %p337_p6, %p334_p5 }
  0xc1   :  { %342 = shalt.err (!%p339_p7)
}
  0xc2   :  { %207 = dma.vmem_to_hbm [thread:$0]  %s205_s20, 32, %s470_s3, [#allocation4]  }
 0x18d   :  { %v191_v53 = vpop.f32.mrb[0].mxu0 }
 0x18e   :  { %195 = vst [vmem:[%s469_s2] sm:$0x3] %v191_v53  ;;  %v282_v54 = vpop.f32.mrb[1].mxu0 }
 0x18f   :  { %343 = dma.done.wait [#allocation4], 32  }
 0x190   :  { %344 = vsyncadd [#allocation4], 4294967264 }
 0x191   :  { %213 = vsyncpa [#allocation4], 1 }

</bundles_post_ra>
